<compile_context>
chip_gen: v6e
topology: v6e:2x2x1
jax: 0.10.0
libtpu: 0.0.40
codegen_flags: <defaults>
</compile_context>

<pallas_src>
import functools

import jax
import jax.numpy as jnp
from jax.experimental import pallas as pl
from jax.experimental.pallas import tpu as pltpu


_LANES = 128
_VMEM_LIMIT = 32 * 1024 * 1024  # fits v5e/v6e/v7x scoped-VMEM budgets with headroom


def _round_up(x, m):
    return (x + m - 1) // m * m


def _pick_th(h_out, w_out, max_rows=2048):
    """Rows-per-tile: largest divisor th of h_out with th*w_out <= max_rows and
    th*w_out sublane-aligned (multiple of 8); falls back to the full image."""
    best = None
    max_th = max(1, max_rows // max(w_out, 1))
    for cand in range(1, h_out + 1):
        if h_out % cand == 0 and cand <= max_th and (cand * w_out) % 8 == 0:
            best = cand
    return h_out if best is None else best


# ---------------------------------------------------------------------------
# Pass 1: conv (k row-tap matmuls on the MXU) + per-channel sum / sum-of-squares.
# ---------------------------------------------------------------------------
def _conv_stats_kernel(x_ref, w_ref, y_ref, sum_ref, sq_ref, *,
                       k, rows, tap_stride, sublane_aligned):
    n = pl.program_id(0)
    t = pl.program_id(1)

    @pl.when((n == 0) & (t == 0))
    def _init():
        sum_ref[...] = jnp.zeros_like(sum_ref)
        sq_ref[...] = jnp.zeros_like(sq_ref)

    base = t * rows                              # row offset of this output tile
    c_pad = w_ref.shape[-1]
    acc = jnp.zeros((rows, c_pad), jnp.float32)
    for i in range(k):                           # static unrolled loop over the k row taps
        start = base + i * tap_stride
        if sublane_aligned:
            start = pl.multiple_of(start, 8)
        tap = x_ref[0, pl.ds(start, rows), :]    # [rows, k*C_in]
        acc = acc + jnp.dot(tap, w_ref[i], preferred_element_type=jnp.float32)

    y_ref[0] = acc.astype(y_ref.dtype)
    # Revisited accumulator blocks (constant index_map, "arbitrary" grid axes).
    sum_ref[...] += jnp.sum(acc, axis=0, keepdims=True)
    sq_ref[...] += jnp.sum(acc * acc, axis=0, keepdims=True)


# ---------------------------------------------------------------------------
# Pass 2: fused BatchNorm affine (folded scale/shift) + ReLU6.
# ---------------------------------------------------------------------------
def _bn_relu6_kernel(y_ref, scale_ref, shift_ref, o_ref):
    out = y_ref[...] * scale_ref[...] + shift_ref[...]
    o_ref[...] = jnp.clip(out, 0.0, 6.0).astype(o_ref.dtype)


def slim_conv_bn_nhwc(x_nhwc, w_oihw, gamma, beta, *, stride, eps=1e-5,
                      mxu_dtype=jnp.bfloat16, out_dtype=jnp.float32):
    """SlimConvBN forward, NHWC activations. x: [N,H,W,C_in], w: [C_out,C_in,k,k]."""
    N, H, W, C_in = x_nhwc.shape
    C_out, _, k, _ = w_oihw.shape
    pad = k // 2                                  # PyTorch padding = kernel_size // 2 (odd k)
    s = stride
    H_out = (H + 2 * pad - k) // s + 1
    W_out = (W + 2 * pad - k) // s + 1
    Hp = H + 2 * pad
    KC = k * C_in
    C_pad = _round_up(C_out, _LANES)              # lane-dense channel dimension

    # ---- glue: spatial pad + W-direction im2col (k-fold, not k^2-fold, blow-up) ----
    xp = jnp.pad(x_nhwc, ((0, 0), (pad, pad), (pad, pad), (0, 0)))
    cols = [xp[:, :, j:j + (W_out - 1) * s + 1:s, :] for j in range(k)]
    xw = jnp.stack(cols, axis=3).reshape(N, Hp, W_out, KC)   # [N, Hp, Wo, k*C_in]

    if s == 1:
        # Row taps are shifted views of one buffer -> resolved in-kernel with pl.ds.
        xrows = xw.reshape(N, Hp * W_out, KC)
        tap_stride = W_out
    else:
        # TODO(synk): fuse the strided row taps in-kernel too (strided pl.ds on a 3-D
        # block); for stride > 1 the per-tap row subsampling is materialized here.
        taps = [xw[:, i:i + (H_out - 1) * s + 1:s, :, :] for i in range(k)]
        xrows = jnp.stack(taps, axis=1).reshape(N, k * H_out * W_out, KC)
        tap_stride = H_out * W_out
    xrows = xrows.astype(mxu_dtype)
    R = xrows.shape[1]

    # Weight [C_out, C_in, kh, kw] -> per-row-tap [k, kw*C_in, C_pad], zero-padded lanes.
    wt = jnp.transpose(w_oihw, (2, 3, 1, 0)).reshape(k, KC, C_out)
    wt = jnp.pad(wt, ((0, 0), (0, 0), (0, C_pad - C_out))).astype(mxu_dtype)

    gamma_p = jnp.pad(gamma.astype(jnp.float32), (0, C_pad - C_out), constant_values=1.0)
    beta_p = jnp.pad(beta.astype(jnp.float32), (0, C_pad - C_out))

    th = _pick_th(H_out, W_out)
    rows = th * W_out                             # rows per M-tile
    n_t = H_out // th
    M = N * H_out * W_out

    # ---- pass 1: conv + global per-channel statistics ----
    y, ch_sum, ch_sq = pl.pallas_call(
        functools.partial(_conv_stats_kernel, k=k, rows=rows,
                          tap_stride=tap_stride, sublane_aligned=(W_out % 8 == 0)),
        grid=(N, n_t),
        in_specs=[
            pl.BlockSpec((1, R, KC), lambda n, t: (n, 0, 0)),      # per-image row buffer
            pl.BlockSpec((k, KC, C_pad), lambda n, t: (0, 0, 0)),  # weights: VMEM-resident
        ],
        out_specs=(
            pl.BlockSpec((1, rows, C_pad), lambda n, t: (n, t, 0)),
            pl.BlockSpec((1, C_pad), lambda n, t: (0, 0)),         # revisited accumulators
            pl.BlockSpec((1, C_pad), lambda n, t: (0, 0)),
        ),
        out_shape=(
            jax.ShapeDtypeStruct((N, H_out * W_out, C_pad), jnp.float32),
            jax.ShapeDtypeStruct((1, C_pad), jnp.float32),
            jax.ShapeDtypeStruct((1, C_pad), jnp.float32),
        ),
        compiler_params=pltpu.CompilerParams(
            dimension_semantics=("arbitrary", "arbitrary"),
            vmem_limit_bytes=_VMEM_LIMIT),
    )(xrows, wt)

    # ---- tiny per-channel glue: fold BN stats + gamma/beta into scale/shift ----
    cnt = jnp.float32(M)
    mean = ch_sum / cnt                                            # [1, C_pad]
    var = jnp.maximum(ch_sq / cnt - mean * mean, 0.0)              # biased (training) variance
    inv = jax.lax.rsqrt(var + jnp.float32(eps))
    scale = gamma_p[None, :] * inv
    shift = beta_p[None, :] - mean * scale

    # ---- pass 2: normalize + affine + ReLU6 (parallel over M tiles) ----
    y2 = y.reshape(M, C_pad)
    out2 = pl.pallas_call(
        _bn_relu6_kernel,
        grid=(M // rows,),
        in_specs=[
            pl.BlockSpec((rows, C_pad), lambda i: (i, 0)),
            pl.BlockSpec((1, C_pad), lambda i: (0, 0)),            # scale: VMEM-resident
            pl.BlockSpec((1, C_pad), lambda i: (0, 0)),            # shift: VMEM-resident
        ],
        out_specs=pl.BlockSpec((rows, C_pad), lambda i: (i, 0)),
        out_shape=jax.ShapeDtypeStruct((M, C_pad), out_dtype),
        compiler_params=pltpu.CompilerParams(
            dimension_semantics=("parallel",),
            vmem_limit_bytes=_VMEM_LIMIT),
    )(y2, scale, shift)

    return out2[:, :C_out].reshape(N, H_out, W_out, C_out)


def slim_conv_bn(x_nchw, w_oihw, gamma, beta, *, stride, eps=1e-5,
                 mxu_dtype=jnp.bfloat16, out_dtype=jnp.float32):
    """NCHW shim for PyTorch parity. Keeping the surrounding model NHWC (use
    slim_conv_bn_nhwc directly) avoids both layout transposes (pure HBM traffic)."""
    x = jnp.transpose(x_nchw, (0, 2, 3, 1))
    out = slim_conv_bn_nhwc(x, w_oihw, gamma, beta, stride=stride, eps=eps,
                            mxu_dtype=mxu_dtype, out_dtype=out_dtype)
    return jnp.transpose(out, (0, 3, 1, 2))


def _reference(x_nchw, w_oihw, gamma, beta, *, stride, eps=1e-5,
               conv_dtype=jnp.float32, precision=None):
    # Pure-JAX reference: conv (NCHW/OIHW) + training-mode BN + ReLU6.
    pad = w_oihw.shape[-1] // 2
    y = jax.lax.conv_general_dilated(
        x_nchw.astype(conv_dtype), w_oihw.astype(conv_dtype),
        window_strides=(stride, stride),
        padding=[(pad, pad), (pad, pad)],
        dimension_numbers=("NCHW", "OIHW", "NCHW"),
        preferred_element_type=jnp.float32,
        precision=precision,
    )
    mean = jnp.mean(y, axis=(0, 2, 3), keepdims=True)
    var = jnp.mean((y - mean) ** 2, axis=(0, 2, 3), keepdims=True)
    xhat = (y - mean) * jax.lax.rsqrt(var + eps)
    out = xhat * gamma.reshape(1, -1, 1, 1) + beta.reshape(1, -1, 1, 1)
    return jnp.clip(out, 0.0, 6.0)


if __name__ == "__main__":
    # SlimConvBN(inp=4, oup=8, kernel_size=3, stride=1, nlin_layer=nn.ReLU6)
    inp, oup, ksize, stride = 4, 8, 3, 1
    N, H, W = 2, 16, 16

    key = jax.random.PRNGKey(0)
    kx, kw, kg, kb = jax.random.split(key, 4)
    x = jax.random.normal(kx, (N, inp, H, W), dtype=jnp.float32)
    w = 0.1 * jax.random.normal(kw, (oup, inp, ksize, ksize), dtype=jnp.float32)
    gamma = 1.0 + 0.1 * jax.random.normal(kg, (oup,), dtype=jnp.float32)
    beta = 0.1 * jax.random.normal(kb, (oup,), dtype=jnp.float32)

    # f32 MXU operands: forward parity with the PyTorch module.
    out_f32 = jax.block_until_ready(
        slim_conv_bn(x, w, gamma, beta, stride=stride, mxu_dtype=jnp.float32))
    ref_f32 = _reference(x, w, gamma, beta, stride=stride,
                         precision=jax.lax.Precision.HIGHEST)
    assert out_f32.shape == ref_f32.shape == (N, oup, H, W)
    assert jnp.allclose(out_f32, ref_f32, atol=1e-3, rtol=1e-3)

    # Default bf16 MXU operands (recommended on v6e/v7x); compare against a
    # reference whose conv inputs are identically bf16-quantized (f32 accumulation).
    out_bf16 = jax.block_until_ready(slim_conv_bn(x, w, gamma, beta, stride=stride))
    ref_bf16 = _reference(x, w, gamma, beta, stride=stride, conv_dtype=jnp.bfloat16)
    assert out_bf16.shape == (N, oup, H, W)
    assert jnp.allclose(out_bf16, ref_bf16, atol=5e-3, rtol=5e-3)

    print("KERNEL_OK")
</pallas_src>

<mosaic_0001>
module attributes {stable_mosaic.version = 11 : i64} {
  func.func @_conv_stats_kernel(%arg0: i32, %arg1: i32, %arg2: memref<1x288x12xf32, #tpu.memory_space<vmem>>, %arg3: memref<3x12x128xf32, #tpu.memory_space<vmem>>, %arg4: memref<1x256x128xf32, #tpu.memory_space<vmem>>, %arg5: memref<1x128xf32, #tpu.memory_space<vmem>>, %arg6: memref<1x128xf32, #tpu.memory_space<vmem>>) attributes {dimension_semantics = [#tpu.dimension_semantics<arbitrary>, #tpu.dimension_semantics<arbitrary>], iteration_bounds = array<i64: 2, 1>, scalar_prefetch = 0 : i64, scratch_operands = 0 : i64, tpu.core_type = #tpu.core_type<tc>, window_params = [{transform_indices = @transform_0, window_bounds = array<i64: 1, 288, 12>}, {pipeline_mode = #tpu.pipeline_mode<synchronous>, transform_indices = @transform_1, window_bounds = array<i64: 3, 12, 128>}, {transform_indices = @transform_2, window_bounds = array<i64: 1, 256, 128>}, {pipeline_mode = #tpu.pipeline_mode<synchronous>, transform_indices = @transform_3, window_bounds = array<i64: 1, 128>}, {pipeline_mode = #tpu.pipeline_mode<synchronous>, transform_indices = @transform_4, window_bounds = array<i64: 1, 128>}]} {
    %c0_i32 = arith.constant 0 : i32
    %0 = arith.cmpi eq, %arg0, %c0_i32 : i32
    %c0_i32_0 = arith.constant 0 : i32
    %1 = arith.cmpi eq, %arg1, %c0_i32_0 : i32
    %2 = arith.andi %0, %1 : i1
    %3 = arith.extui %2 : i1 to i32
    %c0_i32_1 = arith.constant 0 : i32
    %4 = arith.cmpi ne, %3, %c0_i32_1 : i32
    scf.if %4 {
      %cst_31 = arith.constant 0.000000e+00 : f32
      %48 = vector.broadcast %cst_31 : f32 to vector<1x128xf32>
      %c0_32 = arith.constant 0 : index
      %c0_33 = arith.constant 0 : index
      %49 = vector.load %arg5[%c0_32, %c0_33] : memref<1x128xf32, #tpu.memory_space<vmem>>, vector<1x128xf32>
      tpu.vector_store %arg5[%c0_32, %c0_33], %48 {strides = array<i32>} : memref<1x128xf32, #tpu.memory_space<vmem>>, vector<1x128xf32>,
      %cst_34 = arith.constant 0.000000e+00 : f32
      %50 = vector.broadcast %cst_34 : f32 to vector<1x128xf32>
      %c0_35 = arith.constant 0 : index
      %c0_36 = arith.constant 0 : index
      %51 = vector.load %arg6[%c0_35, %c0_36] : memref<1x128xf32, #tpu.memory_space<vmem>>, vector<1x128xf32>
      tpu.vector_store %arg6[%c0_35, %c0_36], %50 {strides = array<i32>} : memref<1x128xf32, #tpu.memory_space<vmem>>, vector<1x128xf32>,
    } else {
    }
    %c256_i32 = arith.constant 256 : i32
    %5 = arith.muli %arg1, %c256_i32 : i32
    %cst = arith.constant 0.000000e+00 : f32
    %6 = vector.broadcast %cst : f32 to vector<256x128xf32>
    %c0_i32_2 = arith.constant 0 : i32
    %7 = arith.addi %5, %c0_i32_2 : i32
    %8 = tpu.assume_multiple %7, 8 : i32
    %c0 = arith.constant 0 : index
    %9 = arith.index_cast %8 : i32 to index
    %c0_3 = arith.constant 0 : index
    %10 = vector.load %arg2[%c0, %9, %c0_3] : memref<1x288x12xf32, #tpu.memory_space<vmem>>, vector<1x256x12xf32>
    %11 = vector.shape_cast %10 : vector<1x256x12xf32> to vector<256x12xf32>
    %c0_4 = arith.constant 0 : index
    %c0_5 = arith.constant 0 : index
    %c0_6 = arith.constant 0 : index
    %12 = vector.load %arg3[%c0_4, %c0_5, %c0_6] : memref<3x12x128xf32, #tpu.memory_space<vmem>>, vector<1x12x128xf32>
    %13 = vector.shape_cast %12 : vector<1x12x128xf32> to vector<12x128xf32>
    %cst_7 = arith.constant dense<0.000000e+00> : vector<256x128xf32>
    %14 = tpu.matmul %11, %13, %cst_7 {dimension_numbers = #tpu.dot_dimension_numbers<[1], [0], [0], [1], [0, 0, 1, 1], [], []>} : vector<256x12xf32>, vector<12x128xf32>, vector<256x128xf32> -> vector<256x128xf32>
    %15 = arith.addf %6, %14 : vector<256x128xf32>
    %c16_i32 = arith.constant 16 : i32
    %16 = arith.addi %5, %c16_i32 : i32
    %17 = tpu.assume_multiple %16, 8 : i32
    %c0_8 = arith.constant 0 : index
    %18 = arith.index_cast %17 : i32 to index
    %c0_9 = arith.constant 0 : index
    %19 = vector.load %arg2[%c0_8, %18, %c0_9] : memref<1x288x12xf32, #tpu.memory_space<vmem>>, vector<1x256x12xf32>
    %20 = vector.shape_cast %19 : vector<1x256x12xf32> to vector<256x12xf32>
    %c1 = arith.constant 1 : index
    %c0_10 = arith.constant 0 : index
    %c0_11 = arith.constant 0 : index
    %21 = vector.load %arg3[%c1, %c0_10, %c0_11] : memref<3x12x128xf32, #tpu.memory_space<vmem>>, vector<1x12x128xf32>
    %22 = vector.shape_cast %21 : vector<1x12x128xf32> to vector<12x128xf32>
    %cst_12 = arith.constant dense<0.000000e+00> : vector<256x128xf32>
    %23 = tpu.matmul %20, %22, %cst_12 {dimension_numbers = #tpu.dot_dimension_numbers<[1], [0], [0], [1], [0, 0, 1, 1], [], []>} : vector<256x12xf32>, vector<12x128xf32>, vector<256x128xf32> -> vector<256x128xf32>
    %24 = arith.addf %15, %23 : vector<256x128xf32>
    %c32_i32 = arith.constant 32 : i32
    %25 = arith.addi %5, %c32_i32 : i32
    %26 = tpu.assume_multiple %25, 8 : i32
    %c0_13 = arith.constant 0 : index
    %27 = arith.index_cast %26 : i32 to index
    %c0_14 = arith.constant 0 : index
    %28 = vector.load %arg2[%c0_13, %27, %c0_14] : memref<1x288x12xf32, #tpu.memory_space<vmem>>, vector<1x256x12xf32>
    %29 = vector.shape_cast %28 : vector<1x256x12xf32> to vector<256x12xf32>
    %c2 = arith.constant 2 : index
    %c0_15 = arith.constant 0 : index
    %c0_16 = arith.constant 0 : index
    %30 = vector.load %arg3[%c2, %c0_15, %c0_16] : memref<3x12x128xf32, #tpu.memory_space<vmem>>, vector<1x12x128xf32>
    %31 = vector.shape_cast %30 : vector<1x12x128xf32> to vector<12x128xf32>
    %cst_17 = arith.constant dense<0.000000e+00> : vector<256x128xf32>
    %32 = tpu.matmul %29, %31, %cst_17 {dimension_numbers = #tpu.dot_dimension_numbers<[1], [0], [0], [1], [0, 0, 1, 1], [], []>} : vector<256x12xf32>, vector<12x128xf32>, vector<256x128xf32> -> vector<256x128xf32>
    %33 = arith.addf %24, %32 : vector<256x128xf32>
    %c0_18 = arith.constant 0 : index
    %c0_19 = arith.constant 0 : index
    %c0_20 = arith.constant 0 : index
    %34 = vector.load %arg4[%c0_18, %c0_19, %c0_20] : memref<1x256x128xf32, #tpu.memory_space<vmem>>, vector<1x256x128xf32>
    %35 = vector.shape_cast %34 : vector<1x256x128xf32> to vector<256x128xf32>
    %36 = vector.shape_cast %33 : vector<256x128xf32> to vector<1x256x128xf32>
    tpu.vector_store %arg4[%c0_18, %c0_19, %c0_20], %36 {strides = array<i32>} : memref<1x256x128xf32, #tpu.memory_space<vmem>>, vector<1x256x128xf32>,
    %c0_21 = arith.constant 0 : index
    %c0_22 = arith.constant 0 : index
    %37 = vector.load %arg5[%c0_21, %c0_22] : memref<1x128xf32, #tpu.memory_space<vmem>>, vector<1x128xf32>
    %cst_23 = arith.constant dense<0.000000e+00> : vector<128xf32>
    %38 = vector.multi_reduction <add>, %33, %cst_23 [0] : vector<256x128xf32> to vector<128xf32>
    %39 = vector.shape_cast %38 : vector<128xf32> to vector<1x128xf32>
    %40 = arith.addf %37, %39 : vector<1x128xf32>
    %c0_24 = arith.constant 0 : index
    %c0_25 = arith.constant 0 : index
    %41 = vector.load %arg5[%c0_24, %c0_25] : memref<1x128xf32, #tpu.memory_space<vmem>>, vector<1x128xf32>
    tpu.vector_store %arg5[%c0_24, %c0_25], %40 {strides = array<i32>} : memref<1x128xf32, #tpu.memory_space<vmem>>, vector<1x128xf32>,
    %c0_26 = arith.constant 0 : index
    %c0_27 = arith.constant 0 : index
    %42 = vector.load %arg6[%c0_26, %c0_27] : memref<1x128xf32, #tpu.memory_space<vmem>>, vector<1x128xf32>
    %43 = arith.mulf %33, %33 : vector<256x128xf32>
    %cst_28 = arith.constant dense<0.000000e+00> : vector<128xf32>
    %44 = vector.multi_reduction <add>, %43, %cst_28 [0] : vector<256x128xf32> to vector<128xf32>
    %45 = vector.shape_cast %44 : vector<128xf32> to vector<1x128xf32>
    %46 = arith.addf %42, %45 : vector<1x128xf32>
    %c0_29 = arith.constant 0 : index
    %c0_30 = arith.constant 0 : index
    %47 = vector.load %arg6[%c0_29, %c0_30] : memref<1x128xf32, #tpu.memory_space<vmem>>, vector<1x128xf32>
    tpu.vector_store %arg6[%c0_29, %c0_30], %46 {strides = array<i32>} : memref<1x128xf32, #tpu.memory_space<vmem>>, vector<1x128xf32>,
    return
  }
  func.func @transform_0(%arg0: i32, %arg1: i32) -> (i32, i32, i32) {
    %c0_i32 = arith.constant 0 : i32
    %c0_i32_0 = arith.constant 0 : i32
    %c0_i32_1 = arith.constant 0 : i32
    return %arg0, %c0_i32, %c0_i32_0 : i32, i32, i32
  }
  func.func @transform_1(%arg0: i32, %arg1: i32) -> (i32, i32, i32) {
    %c0_i32 = arith.constant 0 : i32
    %c0_i32_0 = arith.constant 0 : i32
    %c0_i32_1 = arith.constant 0 : i32
    %c0_i32_2 = arith.constant 0 : i32
    return %c0_i32, %c0_i32_0, %c0_i32_1 : i32, i32, i32
  }
  func.func @transform_2(%arg0: i32, %arg1: i32) -> (i32, i32, i32) {
    %c0_i32 = arith.constant 0 : i32
    %c0_i32_0 = arith.constant 0 : i32
    return %arg0, %arg1, %c0_i32 : i32, i32, i32
  }
  func.func @transform_3(%arg0: i32, %arg1: i32) -> (i32, i32) {
    %c0_i32 = arith.constant 0 : i32
    %c0_i32_0 = arith.constant 0 : i32
    %c0_i32_1 = arith.constant 0 : i32
    return %c0_i32, %c0_i32_0 : i32, i32
  }
  func.func @transform_4(%arg0: i32, %arg1: i32) -> (i32, i32) {
    %c0_i32 = arith.constant 0 : i32
    %c0_i32_0 = arith.constant 0 : i32
    %c0_i32_1 = arith.constant 0 : i32
    return %c0_i32, %c0_i32_0 : i32, i32
  }
}

</mosaic_0001>

<bundles_post_ra>
// kernel: tpu_custom_call.1
= control target key start
LH: loop header
LB: loop body
LE: loop exit
PB: predicated region body
PF: predicated region fallthrough
CT: control target
= control target key end

     0   :  { %10 = vsyncpa [#allocation3], 0  ;;  %s2811_s0 = inlined_call_operand.vmem [shape: f32[2,288,12], index: 0, kind: input, shape index: {}]   ;;  %s2812_s1 = inlined_call_operand.vmem [shape: f32[3,12,128], index: 1, kind: input, shape index: {}]   ;;  %s2813_s2 = inlined_call_operand.hbm [shape: f32[2,256,128], index: 2, kind: output, shape index: {0}]   ;;  %s2814_s3 = inlined_call_operand.hbm [shape: f32[1,128], index: 3, kind: output, shape index: {1}]   ;;  %s2815_s4 = inlined_call_operand.hbm [shape: f32[1,128], index: 4, kind: output, shape index: {2}]  }
   0x1   :  { %12 = vsyncpa [#allocation3 + $0x1], 0 }
   0x2   :  { %13 = vsyncpa [#allocation5], 0  ;;  %s2297_s15 = smov 0   ;;  %s2299_s16 = smov 0  }
   0x3   :  { %s2301_s17 = smov 0   ;;  %s2303_s18 = smov 0  }
   0x4   :  { %s2305_s19 = smov 0   ;;  %s2307_s20 = smov 0  }
   0x5 LB: > { %s1615_s21 = sadd.s32 4294967295, %s2264_s20   ;;  %s1616_s22 = sadd.s32 4294967294, %s2264_s20   ;;  %s2264_s20 = sphi %s2307_s20, %s19_s20   ;;  %s2260_s19 = sphi %s2305_s19, %s2823_s19   ;;  %s2256_s18 = sphi %s2303_s18, %s2822_s18   ;;  %s2252_s17 = sphi %s2301_s17, %s2821_s17   ;;  %s2248_s16 = sphi %s2299_s16, %s2820_s16   ;;  %s2244_s15 = sphi %s2297_s15, %s2819_s15  }
   0x6   : > { %s31_s23 = sadd.s32 1, %s2260_s19  ;;  %s87_s24 = sadd.s32 1, %s2252_s17 }
   0x7   : > { %p33_p0 = scmp.ge.s32.totalorder %s31_s23, 2  ;;  %p97_p1 = scmp.ne.s32.totalorder %s2252_s17, %s2248_s16 }
   0x8   : > { %p2333_p2 = scmp.eq.s32.totalorder %s1615_s21, 1  ;;  %p103_p3 = scmp.ne.s32.totalorder %s2248_s16, %s2244_s15 }
   0x9   : > { %s2825_s23 = smov (%p33_p0, %s31_s23), 0  ;;  %p104_p5 = scmp.eq.s32.totalorder %s1616_s22, 1 }
   0xa   : > { %p2343_p4 = por %p2333_p2, %p97_p1  ;;  %s82_s27 = ssub.s32 %s2260_s19, %s2825_s23 }
   0xb   : > { %p1619_p6 = scmp.ge.s32.totalorder %s2264_s20, 1  ;;  %p85_p7 = scmp.eq.s32.totalorder %s82_s27, 0 }
   0xc   : > { %p2350_p8 = por %p104_p5, %p103_p3  ;;  %p175_p9 = scmp.lt.s32.totalorder %s2264_s20, 3 }
   0xd   : > { %s2356_s29 = scalar_select %p85_p7, %s2252_s17, %s87_s24  }
   0xe   : > { %p176_p10 = pnand %p1619_p6, %p175_p9 }
   0xf   : > { %s194_s30 = sand.u32 (!%p176_p10), 1, %s2248_s16   ;;  %p201_p11 = scmp.lt.s32.totalorder (!%p176_p10), %s2256_s18, 1 }
  0x10   : > { %179 = sbr.rel (%p176_p10) target bundleno = 369 (0x171), region = 28  ;;  %s1620_s5 = sshll.u32 (!%p176_p10), %s194_s30, 8 }
  0x11   : > { %p207_p12 = scmp.eq.s32.totalorder (!%p176_p10), %s2256_s18, 0  ;;  %s2369_s11 = scalar_lea.vmem (!%p176_p10), [#allocation2], %s1620_s5 }
  0x15   : > { %s202_s6 = scalar_select %p201_p11, %s2256_s18, 1  ;;  %v2266_v0 = vmov (%p207_p12), 0.0  }
  0x16   : > { %212 = sbr.rel (!%p207_p12) target bundleno = 27 (0x1b), region = 32  ;;  %213 = vst [vmem:[#allocation4] sm:$0x1] (%p207_p12), %v2266_v0  ;;  %214 = vst [vmem:[#allocation6] sm:$0x1] (%p207_p12), %v2266_v0 }
  0x17   : > { %s2063_s7 = smul.u32 288, %s202_s6 }
  0x19   : > { %s2367_s10 = scalar_lea.vmem %s2811_s0, %s2063_s7 }
  0x1b PF: > { %v1656_v1 = vld [vmem:[%s2812_s1 + $0x18] sm:$0xf]  ;;  %vm385_vm0 = vcmask 1043456   ;;  %v1655_v2 = vld [vmem:[%s2812_s1 + $0x10] sm:$0xff]  ;;  %vm288_vm1 = vcmask 97280   ;;  %v2404_v9 = vld [vmem:[%s2367_s10 + $0xa0] sm:$0xff] }
  0x1c   : > { %2059 = vmatprep.subr.msk.mxu1 %vm385_vm0, %v1656_v1  ;;  %1903 = vmatprep.subr.msk.mxu0 %vm385_vm0, %v1656_v1  ;;  %v2380_v3 = vld [vmem:[%s2367_s10 + $0x90] sm:$0xff]  ;;  %v2388_v5 = vld [vmem:[%s2367_s10 + $0x98] sm:$0xff]  ;;  %v250_v6 = vld [vmem:[%s2812_s1 + $0x8] sm:$0xf]  ;;  %s1491_s12 = sshll.u32 %s2369_s11, 4  ;;  %s2748_s21 = scalar_lea.sflag [#allocation3], %s194_s30  ;;  %s2742_s12 = int_to_ptr.vmem [resolvable:$true] %s1491_s12 }
  0x1d   : > { %2061 = vmatpush3.msk.msra.mxu1 %vm385_vm0, %v1656_v1  ;;  %1904 = vmatpush3.msk.msra.mxu0 %vm385_vm0, %v1656_v1  ;;  %v2385_v4 = vld [vmem:[%s2367_s10 + $0x10] sm:$0xff]  ;;  %v2396_v7 = vld [vmem:[%s2367_s10 + $0x18] sm:$0xff]  ;;  %v1756_v8 = vld [vmem:[%s2812_s1 + $0x28] sm:$0xf]  ;;  %s2136_s22 = scalar_lea.vmem %s2742_s12, 4096  ;;  %s2267_s24 = smov [#allocation2]  }
  0x1e   : > { %2060 = vmatprep.subr.mxu1 %v1655_v2  ;;  %1905 = vmatprep.subr.mxu0 %v1655_v2  ;;  %v2410_v10 = vld [vmem:[%s2367_s10 + $0x20] sm:$0xff]  ;;  %v2416_v11 = vld [vmem:[%s2367_s10 + $0xa8] sm:$0xff]  ;;  %v2428_v14 = vld [vmem:[%s2367_s10 + $0xb0] sm:$0xff]  ;;  %p2137_p13 = scmp.ne.s32.totalorder %s2742_s12, %s2136_s22  ;;  %s2140_s27 = sshll.u32 %s2267_s24, 4  ;;  %s2141_s27 = int_to_ptr.vmem [resolvable:$false] %s2140_s27 }
  0x1f   : > { %2062 = vmatpush3.msra.mxu1 %v1655_v2  ;;  %1931 = vmatprep.mubr.msk.f32.mxu1 %vm288_vm1, %v2380_v3  ;;  %v249_v12 = vld [vmem:[%s2812_s1] sm:$0xff]  ;;  %v2425_v13 = vld [vmem:[%s2367_s10 + $0x28] sm:$0xff]  ;;  %v2434_v15 = vld [vmem:[%s2367_s10 + $0x30] sm:$0xff]  ;;  %s2142_s5 = scalar_lea.vmem %s2141_s27, 8192  ;;  %p2143_p3 = scmp.lt.s32.totalorder %s2742_s12, %s2141_s27 }
  0x20   : > { %1906 = vmatpush3.msra.mxu0 %v1655_v2  ;;  %1907 = vmatprep.mubr.msk.f32.mxu0 %vm288_vm1, %v2385_v4  ;;  %v1755_v16 = vld [vmem:[%s2812_s1 + $0x20] sm:$0xff]  ;;  %v2446_v17 = vld [vmem:[%s2367_s10 + $0xb8] sm:$0xff]  ;;  %v2461_v21 = vld [vmem:[%s2367_s10 + $0xc8] sm:$0xff]  ;;  %p2138_p0 = pnand %p2137_p13, %p2343_p4  ;;  %p2144_p5 = scmp.lt.s32.totalorder %s2142_s5, %s2136_s22 }
  0x21   : > { %1932 = vmatmul.mubr.msk.f32.vlgmr.msra.gmra.mxu1 %vm288_vm1, %v2388_v5  ;;  %1955 = vmatprep.subr.msk.mxu1 %vm385_vm0, %v250_v6  ;;  %v1628_v18 = vld [vmem:[%s2367_s10 + $0x38] sm:$0xff]  ;;  %v2452_v19 = vld [vmem:[%s2367_s10 + $0xc0] sm:$0xff]  ;;  %v1630_v22 = vld [vmem:[%s2367_s10 + $0x48] sm:$0xff] }
  0x22   : > { %1908 = vmatmul.mubr.msk.f32.vlgmr.msra.gmra.mxu0 %vm288_vm1, %v2396_v7  ;;  %1956 = vmatpush3.msk.msra.mxu1 %vm385_vm0, %v250_v6  ;;  %v1629_v20 = vld [vmem:[%s2367_s10 + $0x40] sm:$0xff]  ;;  %v2466_v23 = vld [vmem:[%s2367_s10 + $0xd0] sm:$0xff]  ;;  %v2475_v25 = vld [vmem:[%s2367_s10 + $0xd8] sm:$0xff]  ;;  %p2139_p1 = pneg %p2138_p0  ;;  %p2145_p6 = por %p2144_p5, %p2143_p3 }
  0x23   : > { %2007 = vmatprep.subr.msk.mxu0 %vm385_vm0, %v1756_v8  ;;  %1934 = vmatprep.mubr.msk.f32.mxu1 %vm288_vm1, %v2404_v9  ;;  %v1631_v24 = vld [vmem:[%s2367_s10 + $0x50] sm:$0xff]  ;;  %v1632_v26 = vld [vmem:[%s2367_s10 + $0x58] sm:$0xff]  ;;  %v2480_v27 = vld [vmem:[%s2367_s10 + $0xe0] sm:$0xff] }
  0x24   : > { %2008 = vmatpush3.msk.msra.mxu0 %vm385_vm0, %v1756_v8  ;;  %1910 = vmatprep.mubr.msk.f32.mxu0 %vm288_vm1, %v2410_v10  ;;  %v1633_v28 = vld [vmem:[%s2367_s10 + $0x60] sm:$0xff]  ;;  %v2489_v29 = vld [vmem:[%s2367_s10 + $0xe8] sm:$0xff]  ;;  %v2494_v31 = vld [vmem:[%s2367_s10 + $0xf0] sm:$0xff]  ;;  %p2146_p7 = pnand %p2145_p6, %p2139_p1 }
  0x25   : > { %1935 = vmatmul.mubr.msk.f32.gmra.mxu1 %vm288_vm1, %v2416_v11  ;;  %1957 = vmatprep.subr.mxu1 %v249_v12  ;;  %v1634_v30 = vld [vmem:[%s2367_s10 + $0x68] sm:$0xff]  ;;  %v1635_v32 = vld [vmem:[%s2367_s10 + $0x70] sm:$0xff]  ;;  %v2503_v33 = vld [vmem:[%s2367_s10 + $0xf8] sm:$0xff] }
  0x26   : > { %1911 = vmatmul.mubr.msk.f32.gmra.mxu0 %vm288_vm1, %v2425_v13  ;;  %1937 = vmatprep.mubr.msk.f32.mxu1 %vm288_vm1, %v2428_v14  ;;  %v1636_v34 = vld [vmem:[%s2367_s10 + $0x78] sm:$0xff]  ;;  %v2508_v35 = vld [vmem:[%s2367_s10 + $0x100] sm:$0xff]  ;;  %v2517_v37 = vld [vmem:[%s2367_s10 + $0x108] sm:$0xff] }
  0x27   : > { %1913 = vmatprep.mubr.msk.f32.mxu0 %vm288_vm1, %v2434_v15  ;;  %1958 = vmatpush3.msra.mxu1 %v249_v12  ;;  %v1637_v36 = vld [vmem:[%s2367_s10 + $0x80] sm:$0xff]  ;;  %v1638_v38 = vld [vmem:[%s2367_s10 + $0x88] sm:$0xff]  ;;  %v1753_v41 = vld [vmem:[%s2367_s10 + $0x110] sm:$0xff] }
  0x28   : > { %2009 = vmatprep.subr.mxu0 %v1755_v16  ;;  %v217_v39 = vld [vmem:[%s2367_s10] sm:$0xff]  ;;  %v218_v40 = vld [vmem:[%s2367_s10 + $0x8] sm:$0xff]  ;;  %v1754_v42 = vld [vmem:[%s2367_s10 + $0x118] sm:$0xff]  ;;  %s1800_s10 = sshll.u32 %s2256_s18, 12 }
  0x29   : > { %1938 = vmatmul.mubr.msk.f32.gmra.mxu1 %vm288_vm1, %v2446_v17  ;;  %2010 = vmatpush3.msra.mxu0 %v1755_v16  ;;  %s2740_s18 = scalar_lea.hbm %s2813_s2, %s1800_s10 }
  0x2a   : > { %1914 = vmatmul.mubr.msk.f32.gmra.mxu0 %vm288_vm1, %v1628_v18  ;;  %1940 = vmatprep.mubr.msk.f32.mxu1 %vm288_vm1, %v2452_v19 }
  0x2b   : > { %1916 = vmatprep.mubr.msk.f32.mxu0 %vm288_vm1, %v1629_v20 }
  0x2d   : > { %1941 = vmatmul.mubr.msk.f32.gmra.mxu1 %vm288_vm1, %v2461_v21 }
  0x2e   : > { %1917 = vmatmul.mubr.msk.f32.gmra.mxu0 %vm288_vm1, %v1630_v22  ;;  %1943 = vmatprep.mubr.msk.f32.mxu1 %vm288_vm1, %v2466_v23 }
  0x2f   : > { %1919 = vmatprep.mubr.msk.f32.mxu0 %vm288_vm1, %v1631_v24 }
  0x31   : > { %1944 = vmatmul.mubr.msk.f32.gmra.mxu1 %vm288_vm1, %v2475_v25 }
  0x32   : > { %1920 = vmatmul.mubr.msk.f32.gmra.mxu0 %vm288_vm1, %v1632_v26  ;;  %1946 = vmatprep.mubr.msk.f32.mxu1 %vm288_vm1, %v2480_v27 }
  0x33   : > { %1922 = vmatprep.mubr.msk.f32.mxu0 %vm288_vm1, %v1633_v28 }
  0x35   : > { %1947 = vmatmul.mubr.msk.f32.gmra.mxu1 %vm288_vm1, %v2489_v29 }
  0x36   : > { %1923 = vmatmul.mubr.msk.f32.gmra.mxu0 %vm288_vm1, %v1634_v30  ;;  %1949 = vmatprep.mubr.msk.f32.mxu1 %vm288_vm1, %v2494_v31 }
  0x37   : > { %1925 = vmatprep.mubr.msk.f32.mxu0 %vm288_vm1, %v1635_v32 }
  0x39   : > { %1950 = vmatmul.mubr.msk.f32.gmra.mxu1 %vm288_vm1, %v2503_v33 }
  0x3a   : > { %1926 = vmatmul.mubr.msk.f32.gmra.mxu0 %vm288_vm1, %v1636_v34  ;;  %1952 = vmatprep.mubr.msk.f32.mxu1 %vm288_vm1, %v2508_v35 }
  0x3b   : > { %1928 = vmatprep.mubr.msk.f32.mxu0 %vm288_vm1, %v1637_v36 }
  0x3d   : > { %1953 = vmatmul.mubr.msk.f32.gmra.mxu1 %vm288_vm1, %v2517_v37 }
  0x3e   : > { %1929 = vmatmul.mubr.msk.f32.gmra.mxu0 %vm288_vm1, %v1638_v38  ;;  %1959 = vmatprep.mubr.msk.f32.mxu1 %vm288_vm1, %v217_v39 }
  0x3f   : > { %2011 = vmatprep.mubr.msk.f32.mxu0 %vm288_vm1, %v2410_v10 }
  0x41   : > { %1960 = vmatmul.mubr.msk.f32.vlgmr.msra.gmra.mxu1 %vm288_vm1, %v218_v40 }
  0x42   : > { %2012 = vmatmul.mubr.msk.f32.vlgmr.msra.gmra.mxu0 %vm288_vm1, %v2425_v13  ;;  %1962 = vmatprep.mubr.msk.f32.mxu1 %vm288_vm1, %v2385_v4 }
  0x43   : > { %2014 = vmatprep.mubr.msk.f32.mxu0 %vm288_vm1, %v2434_v15 }
  0x45   : > { %1963 = vmatmul.mubr.msk.f32.gmra.mxu1 %vm288_vm1, %v2396_v7 }
  0x46   : > { %2015 = vmatmul.mubr.msk.f32.gmra.mxu0 %vm288_vm1, %v1628_v18  ;;  %1965 = vmatprep.mubr.msk.f32.mxu1 %vm288_vm1, %v2410_v10 }
  0x47   : > { %2017 = vmatprep.mubr.msk.f32.mxu0 %vm288_vm1, %v1629_v20 }
  0x49   : > { %1966 = vmatmul.mubr.msk.f32.gmra.mxu1 %vm288_vm1, %v2425_v13 }
  0x4a   : > { %2018 = vmatmul.mubr.msk.f32.gmra.mxu0 %vm288_vm1, %v1630_v22  ;;  %1968 = vmatprep.mubr.msk.f32.mxu1 %vm288_vm1, %v2434_v15 }
  0x4b   : > { %2020 = vmatprep.mubr.msk.f32.mxu0 %vm288_vm1, %v1631_v24 }
  0x4d   : > { %1969 = vmatmul.mubr.msk.f32.gmra.mxu1 %vm288_vm1, %v1628_v18 }
  0x4e   : > { %2021 = vmatmul.mubr.msk.f32.gmra.mxu0 %vm288_vm1, %v1632_v26  ;;  %1971 = vmatprep.mubr.msk.f32.mxu1 %vm288_vm1, %v1629_v20 }
  0x4f   : > { %2023 = vmatprep.mubr.msk.f32.mxu0 %vm288_vm1, %v1633_v28 }
  0x51   : > { %1972 = vmatmul.mubr.msk.f32.gmra.mxu1 %vm288_vm1, %v1630_v22 }
  0x52   : > { %2024 = vmatmul.mubr.msk.f32.gmra.mxu0 %vm288_vm1, %v1634_v30  ;;  %1974 = vmatprep.mubr.msk.f32.mxu1 %vm288_vm1, %v1631_v24 }
  0x53   : > { %2026 = vmatprep.mubr.msk.f32.mxu0 %vm288_vm1, %v1635_v32 }
  0x55   : > { %1975 = vmatmul.mubr.msk.f32.gmra.mxu1 %vm288_vm1, %v1632_v26 }
  0x56   : > { %2027 = vmatmul.mubr.msk.f32.gmra.mxu0 %vm288_vm1, %v1636_v34  ;;  %1977 = vmatprep.mubr.msk.f32.mxu1 %vm288_vm1, %v1633_v28 }
  0x57   : > { %2029 = vmatprep.mubr.msk.f32.mxu0 %vm288_vm1, %v1637_v36 }
  0x59   : > { %1978 = vmatmul.mubr.msk.f32.gmra.mxu1 %vm288_vm1, %v1634_v30 }
  0x5a   : > { %2030 = vmatmul.mubr.msk.f32.gmra.mxu0 %vm288_vm1, %v1638_v38  ;;  %1980 = vmatprep.mubr.msk.f32.mxu1 %vm288_vm1, %v1635_v32 }
  0x5b   : > { %2032 = vmatprep.mubr.msk.f32.mxu0 %vm288_vm1, %v2380_v3 }
  0x5d   : > { %1981 = vmatmul.mubr.msk.f32.gmra.mxu1 %vm288_vm1, %v1636_v34 }
  0x5e   : > { %2033 = vmatmul.mubr.msk.f32.gmra.mxu0 %vm288_vm1, %v2388_v5  ;;  %1983 = vmatprep.mubr.msk.f32.mxu1 %vm288_vm1, %v1637_v36 }
  0x5f   : > { %2035 = vmatprep.mubr.msk.f32.mxu0 %vm288_vm1, %v2404_v9 }
  0x61   : > { %1984 = vmatmul.mubr.msk.f32.gmra.mxu1 %vm288_vm1, %v1638_v38 }
  0x62   : > { %2036 = vmatmul.mubr.msk.f32.gmra.mxu0 %vm288_vm1, %v2416_v11  ;;  %1986 = vmatprep.mubr.msk.f32.mxu1 %vm288_vm1, %v2380_v3 }
  0x63   : > { %2038 = vmatprep.mubr.msk.f32.mxu0 %vm288_vm1, %v2428_v14 }
  0x65   : > { %1987 = vmatmul.mubr.msk.f32.gmra.mxu1 %vm288_vm1, %v2388_v5 }
  0x66   : > { %2039 = vmatmul.mubr.msk.f32.gmra.mxu0 %vm288_vm1, %v2446_v17  ;;  %1989 = vmatprep.mubr.msk.f32.mxu1 %vm288_vm1, %v2404_v9 }
  0x67   : > { %2041 = vmatprep.mubr.msk.f32.mxu0 %vm288_vm1, %v2452_v19 }
  0x69   : > { %1990 = vmatmul.mubr.msk.f32.gmra.mxu1 %vm288_vm1, %v2416_v11 }
  0x6a   : > { %2042 = vmatmul.mubr.msk.f32.gmra.mxu0 %vm288_vm1, %v2461_v21  ;;  %1992 = vmatprep.mubr.msk.f32.mxu1 %vm288_vm1, %v2428_v14 }
  0x6b   : > { %2044 = vmatprep.mubr.msk.f32.mxu0 %vm288_vm1, %v2466_v23 }
  0x6d   : > { %1993 = vmatmul.mubr.msk.f32.gmra.mxu1 %vm288_vm1, %v2446_v17 }
  0x6e   : > { %2045 = vmatmul.mubr.msk.f32.gmra.mxu0 %vm288_vm1, %v2475_v25  ;;  %1995 = vmatprep.mubr.msk.f32.mxu1 %vm288_vm1, %v2452_v19 }
  0x6f   : > { %2047 = vmatprep.mubr.msk.f32.mxu0 %vm288_vm1, %v2480_v27 }
  0x71   : > { %1996 = vmatmul.mubr.msk.f32.gmra.mxu1 %vm288_vm1, %v2461_v21 }
  0x72   : > { %2048 = vmatmul.mubr.msk.f32.gmra.mxu0 %vm288_vm1, %v2489_v29  ;;  %1998 = vmatprep.mubr.msk.f32.mxu1 %vm288_vm1, %v2466_v23 }
  0x73   : > { %2050 = vmatprep.mubr.msk.f32.mxu0 %vm288_vm1, %v2494_v31 }
  0x75   : > { %1999 = vmatmul.mubr.msk.f32.gmra.mxu1 %vm288_vm1, %v2475_v25 }
  0x76   : > { %2051 = vmatmul.mubr.msk.f32.gmra.mxu0 %vm288_vm1, %v2503_v33  ;;  %2001 = vmatprep.mubr.msk.f32.mxu1 %vm288_vm1, %v2480_v27 }
  0x77   : > { %2053 = vmatprep.mubr.msk.f32.mxu0 %vm288_vm1, %v2508_v35 }
  0x79   : > { %2002 = vmatmul.mubr.msk.f32.gmra.mxu1 %vm288_vm1, %v2489_v29 }
  0x7a   : > { %2054 = vmatmul.mubr.msk.f32.gmra.mxu0 %vm288_vm1, %v2517_v37  ;;  %2004 = vmatprep.mubr.msk.f32.mxu1 %vm288_vm1, %v2494_v31 }
  0x7b   : > { %2056 = vmatprep.mubr.msk.f32.mxu0 %vm288_vm1, %v1753_v41 }
  0x7d   : > { %2005 = vmatmul.mubr.msk.f32.gmra.mxu1 %vm288_vm1, %v2503_v33 }
  0x7e   : > { %2057 = vmatmul.mubr.msk.f32.gmra.mxu0 %vm288_vm1, %v1754_v42 }
  0xe1   : > { %v2630_v43 = vpop.f32.mrf.mxu1 }
  0xe2   : > { %v1909_v44 = vpop.f32.mrf.mxu0 }
  0xe3   : > { %v2632_v45 = vpop.f32.mrf.mxu1 }
  0xe4   : > { %v455_v46 = vpop.f32.mrf.mxu0 }
  0xe5   : > { %v2634_v47 = vpop.f32.mrf.mxu1 }
  0xe6   : > { %v1912_v48 = vpop.f32.mrf.mxu0 }
  0xe7   : > { %v2636_v49 = vpop.f32.mrf.mxu1 }
  0xe8   : > { %v465_v50 = vpop.f32.mrf.mxu0 }
  0xe9   : > { %v2638_v51 = vpop.f32.mrf.mxu1 }
  0xea   : > { %v1915_v52 = vpop.f32.mrf.mxu0 }
  0xeb   : > { %v2640_v53 = vpop.f32.mrf.mxu1 }
  0xec   : > { %v475_v54 = vpop.f32.mrf.mxu0 }
  0xed   : > { %v2642_v55 = vpop.f32.mrf.mxu1 }
  0xee   : > { %v1918_v56 = vpop.f32.mrf.mxu0 }
  0xef   : > { %v2644_v57 = vpop.f32.mrf.mxu1 }
  0xf0   : > { %v2646_v58 = vpop.f32.mrf.mxu0 }
  0xf1   : > { %v2648_v59 = vpop.f32.mrf.mxu1 }
  0xf2   : > { %v2650_v60 = vpop.f32.mrf.mxu0 }
  0xf3   : > { %v2652_v61 = vpop.f32.mrf.mxu1 }
  0xf4   : > { %v2654_v62 = vpop.f32.mrf.mxu0 }
  0xf5   : > { %v2656_v63 = vpop.f32.mrf.mxu1 }
  0xf6   : > { %v2658_v0 = vpop.f32.mrf.mxu0 }
  0xf7   : > { %v2660_v1 = vpop.f32.mrf.mxu1 }
  0xf8   : > { %v2662_v2 = vpop.f32.mrf.mxu0 }
  0xf9   : > { %v2664_v3 = vpop.f32.mrf.mxu1 }
  0xfa   : > { %v2666_v4 = vpop.f32.mrf.mxu0 }
  0xfb   : > { %v2668_v5 = vpop.f32.mrf.mxu1 }
  0xfc   : > { %v2670_v6 = vpop.f32.mrf.mxu0 }
  0xfd   : > { %v2672_v7 = vpop.f32.mrf.mxu1 }
  0xfe   : > { %v2674_v8 = vpop.f32.mrf.mxu0 }
  0xff   : > { %v2676_v9 = vpop.f32.mrf.mxu1 }
 0x100   : > { %v2678_v10 = vpop.f32.mrf.mxu0 }
 0x101   : > { %v1961_v11 = vpop.f32.mrf.mxu1 }
 0x102   : > { %v785_v12 = vadd.f32 %v1961_v11, %v1909_v44  ;;  %v2013_v13 = vpop.f32.mrf.mxu0 }
 0x103   : > { %v779_v14 = vpop.f32.mrf.mxu1 }
 0x104   : > { %v1300_v15 = vadd.f32 %v2013_v13, %v785_v12  ;;  %v780_v16 = vadd.f32 %v779_v14, %v455_v46  ;;  %v1140_v17 = vpop.f32.mrf.mxu0 }
 0x105   : > { %v1964_v18 = vpop.f32.mrf.mxu1 }
 0x106   : > { %1332 = vst [vmem:[%s2369_s11 + $0x8] sm:$0xff] %v1300_v15  ;;  %v1299_v19 = vadd.f32 %v1140_v17, %v780_v16  ;;  %v795_v20 = vadd.f32 %v1964_v18, %v1912_v48  ;;  %v2016_v21 = vpop.f32.mrf.mxu0  ;;  %v1405_v27 = vmul.f32 %v1300_v15, %v1300_v15 }
 0x107   : > { %v789_v22 = vpop.f32.mrf.mxu1 }
 0x108   : > { %1331 = vst [vmem:[%s2369_s11] sm:$0xff] %v1299_v19  ;;  %v1404_v23 = vmul.f32 %v1299_v19, %v1299_v19  ;;  %v1302_v24 = vadd.f32 %v2016_v21, %v795_v20  ;;  %v790_v25 = vadd.f32 %v789_v22, %v465_v50  ;;  %v1150_v26 = vpop.f32.mrf.mxu0  ;;  %v1364_v29 = vadd.f32 %v1300_v15, %v1299_v19 }
 0x109   : > { %v1967_v28 = vpop.f32.mrf.mxu1 }
 0x10a   : > { %1334 = vst [vmem:[%s2369_s11 + $0x18] sm:$0xff] %v1302_v24  ;;  %v1301_v30 = vadd.f32 %v1150_v26, %v790_v25  ;;  %v805_v31 = vadd.f32 %v1967_v28, %v1915_v52  ;;  %v2019_v32 = vpop.f32.mrf.mxu0  ;;  %v1436_v33 = vadd.f32 %v1405_v27, %v1404_v23  ;;  %v1407_v41 = vmul.f32 %v1302_v24, %v1302_v24 }
 0x10b   : > { %v799_v34 = vpop.f32.mrf.mxu1 }
 0x10c   : > { %1333 = vst [vmem:[%s2369_s11 + $0x10] sm:$0xff] %v1301_v30  ;;  %v1365_v35 = vadd.f32 %v1364_v29, %v1301_v30  ;;  %v1406_v36 = vmul.f32 %v1301_v30, %v1301_v30  ;;  %v1304_v37 = vadd.f32 %v2019_v32, %v805_v31  ;;  %v800_v38 = vadd.f32 %v799_v34, %v475_v54  ;;  %v1160_v39 = vpop.f32.mrf.mxu0 }
 0x10d   : > { %v1970_v40 = vpop.f32.mrf.mxu1 }
 0x10e   : > { %v1437_v42 = vadd.f32 %v1436_v33, %v1406_v36  ;;  %1336 = vst [vmem:[%s2369_s11 + $0x28] sm:$0xff] %v1304_v37  ;;  %v1303_v44 = vadd.f32 %v1160_v39, %v800_v38  ;;  %v1366_v46 = vadd.f32 %v1365_v35, %v1302_v24  ;;  %v2022_v48 = vpop.f32.mrf.mxu0  ;;  %v815_v50 = vadd.f32 %v1970_v40, %v1918_v56 }
 0x10f   : > { %v809_v52 = vpop.f32.mrf.mxu1  ;;  %v1409_v54 = vmul.f32 %v1304_v37, %v1304_v37 }
 0x110   : > { %1335 = vst [vmem:[%s2369_s11 + $0x20] sm:$0xff] %v1303_v44  ;;  %v1367_v11 = vadd.f32 %v1366_v46, %v1303_v44  ;;  %v1408_v12 = vmul.f32 %v1303_v44, %v1303_v44  ;;  %v1438_v13 = vadd.f32 %v1437_v42, %v1407_v41  ;;  %v810_v14 = vadd.f32 %v809_v52, %v2646_v58  ;;  %v1170_v15 = vpop.f32.mrf.mxu0 }
 0x111   : > { %v1306_v16 = vadd.f32 %v2022_v48, %v815_v50  ;;  %v1973_v17 = vpop.f32.mrf.mxu1 }
 0x112   : > { %v1439_v18 = vadd.f32 %v1438_v13, %v1408_v12  ;;  %v1305_v19 = vadd.f32 %v1170_v15, %v810_v14  ;;  %v1368_v20 = vadd.f32 %v1367_v11, %v1304_v37  ;;  %v825_v21 = vadd.f32 %v1973_v17, %v2650_v60  ;;  %v2025_v56 = vpop.f32.mrf.mxu0 }
 0x113   : > { %1338 = vst [vmem:[%s2369_s11 + $0x38] sm:$0xff] %v1306_v16  ;;  %v819_v22 = vpop.f32.mrf.mxu1  ;;  %v1411_v29 = vmul.f32 %v1306_v16, %v1306_v16 }
 0x114   : > { %1337 = vst [vmem:[%s2369_s11 + $0x30] sm:$0xff] %v1305_v19  ;;  %v1369_v23 = vadd.f32 %v1368_v20, %v1305_v19  ;;  %v1410_v24 = vmul.f32 %v1305_v19, %v1305_v19  ;;  %v1440_v25 = vadd.f32 %v1439_v18, %v1409_v54  ;;  %v1308_v26 = vadd.f32 %v2025_v56, %v825_v21  ;;  %v1180_v58 = vpop.f32.mrf.mxu0 }
 0x115   : > { %v820_v27 = vadd.f32 %v819_v22, %v2654_v62  ;;  %v1976_v28 = vpop.f32.mrf.mxu1 }
 0x116   : > { %v1441_v30 = vadd.f32 %v1440_v25, %v1410_v24  ;;  %1340 = vst [vmem:[%s2369_s11 + $0x48] sm:$0xff] %v1308_v26  ;;  %v1370_v31 = vadd.f32 %v1369_v23, %v1306_v16  ;;  %v835_v60 = vadd.f32 %v1976_v28, %v2658_v0  ;;  %v2028_v32 = vpop.f32.mrf.mxu0  ;;  %v1413_v0 = vmul.f32 %v1308_v26, %v1308_v26 }
 0x117   : > { %v1307_v33 = vadd.f32 %v1180_v58, %v820_v27  ;;  %v829_v34 = vpop.f32.mrf.mxu1 }
 0x118   : > { %v1442_v35 = vadd.f32 %v1441_v30, %v1411_v29  ;;  %v1310_v36 = vadd.f32 %v2028_v32, %v835_v60  ;;  %v830_v37 = vadd.f32 %v829_v34, %v2662_v2  ;;  %v1190_v38 = vpop.f32.mrf.mxu0 }
 0x119   : > { %1339 = vst [vmem:[%s2369_s11 + $0x40] sm:$0xff] %v1307_v33  ;;  %v1371_v39 = vadd.f32 %v1370_v31, %v1307_v33  ;;  %v1412_v62 = vmul.f32 %v1307_v33, %v1307_v33  ;;  %v1979_v40 = vpop.f32.mrf.mxu1 }
 0x11a   : > { %1342 = vst [vmem:[%s2369_s11 + $0x58] sm:$0xff] %v1310_v36  ;;  %v1309_v41 = vadd.f32 %v1190_v38, %v830_v37  ;;  %v845_v42 = vadd.f32 %v1979_v40, %v2666_v4  ;;  %v2031_v44 = vpop.f32.mrf.mxu0  ;;  %v1415_v17 = vmul.f32 %v1310_v36, %v1310_v36 }
 0x11b   : > { %v1443_v46 = vadd.f32 %v1442_v35, %v1412_v62  ;;  %v1372_v48 = vadd.f32 %v1371_v39, %v1308_v26  ;;  %v839_v50 = vpop.f32.mrf.mxu1 }
 0x11c   : > { %1341 = vst [vmem:[%s2369_s11 + $0x50] sm:$0xff] %v1309_v41  ;;  %v1414_v52 = vmul.f32 %v1309_v41, %v1309_v41  ;;  %v1312_v11 = vadd.f32 %v2031_v44, %v845_v42  ;;  %v840_v2 = vadd.f32 %v839_v50, %v2670_v6  ;;  %v1200_v12 = vpop.f32.mrf.mxu0 }
 0x11d   : > { %v1373_v13 = vadd.f32 %v1372_v48, %v1309_v41  ;;  %v1444_v14 = vadd.f32 %v1443_v46, %v1413_v0  ;;  %v1982_v15 = vpop.f32.mrf.mxu1 }
 0x11e   : > { %1344 = vst [vmem:[%s2369_s11 + $0x68] sm:$0xff] %v1312_v11  ;;  %v1311_v54 = vadd.f32 %v1200_v12, %v840_v2  ;;  %v855_v4 = vadd.f32 %v1982_v15, %v2674_v8  ;;  %v2034_v16 = vpop.f32.mrf.mxu0  ;;  %v1417_v27 = vmul.f32 %v1312_v11, %v1312_v11 }
 0x11f   : > { %v1445_v18 = vadd.f32 %v1444_v14, %v1414_v52  ;;  %v1374_v19 = vadd.f32 %v1373_v13, %v1310_v36  ;;  %v849_v20 = vpop.f32.mrf.mxu1 }
 0x120   : > { %1343 = vst [vmem:[%s2369_s11 + $0x60] sm:$0xff] %v1311_v54  ;;  %v1416_v21 = vmul.f32 %v1311_v54, %v1311_v54  ;;  %v1314_v56 = vadd.f32 %v2034_v16, %v855_v4  ;;  %v850_v6 = vadd.f32 %v849_v20, %v2678_v10  ;;  %v1210_v22 = vpop.f32.mrf.mxu0 }
 0x121   : > { %v1375_v23 = vadd.f32 %v1374_v19, %v1311_v54  ;;  %v1446_v24 = vadd.f32 %v1445_v18, %v1415_v17  ;;  %v1985_v25 = vpop.f32.mrf.mxu1 }
 0x122   : > { %1346 = vst [vmem:[%s2369_s11 + $0x78] sm:$0xff] %v1314_v56  ;;  %v1313_v26 = vadd.f32 %v1210_v22, %v850_v6  ;;  %v865_v8 = vadd.f32 %v1985_v25, %v2630_v43  ;;  %v2037_v58 = vpop.f32.mrf.mxu0  ;;  %v1419_v38 = vmul.f32 %v1314_v56, %v1314_v56 }
 0x123   : > { %v1447_v28 = vadd.f32 %v1446_v24, %v1416_v21  ;;  %v1376_v29 = vadd.f32 %v1375_v23, %v1312_v11  ;;  %v859_v30 = vpop.f32.mrf.mxu1 }
 0x124   : > { %1345 = vst [vmem:[%s2369_s11 + $0x70] sm:$0xff] %v1313_v26  ;;  %v1418_v31 = vmul.f32 %v1313_v26, %v1313_v26  ;;  %v1316_v60 = vadd.f32 %v2037_v58, %v865_v8  ;;  %v860_v10 = vadd.f32 %v859_v30, %v2632_v45  ;;  %v1220_v32 = vpop.f32.mrf.mxu0 }
 0x125   : > { %v1377_v33 = vadd.f32 %v1376_v29, %v1313_v26  ;;  %v1448_v34 = vadd.f32 %v1447_v28, %v1417_v27  ;;  %v1988_v35 = vpop.f32.mrf.mxu1 }
 0x126   : > { %1348 = vst [vmem:[%s2369_s11 + $0x88] sm:$0xff] %v1316_v60  ;;  %v1315_v36 = vadd.f32 %v1220_v32, %v860_v10  ;;  %v875_v43 = vadd.f32 %v1988_v35, %v2634_v47  ;;  %v2040_v37 = vpop.f32.mrf.mxu0  ;;  %v1421_v11 = vmul.f32 %v1316_v60, %v1316_v60 }
 0x127   : > { %v1449_v39 = vadd.f32 %v1448_v34, %v1418_v31  ;;  %v1378_v62 = vadd.f32 %v1377_v33, %v1314_v56  ;;  %v869_v40 = vpop.f32.mrf.mxu1 }
 0x128   : > { %1347 = vst [vmem:[%s2369_s11 + $0x80] sm:$0xff] %v1315_v36  ;;  %v1420_v41 = vmul.f32 %v1315_v36, %v1315_v36  ;;  %v1318_v42 = vadd.f32 %v2040_v37, %v875_v43  ;;  %v870_v45 = vadd.f32 %v869_v40, %v2636_v49  ;;  %v1230_v44 = vpop.f32.mrf.mxu0 }
 0x129   : > { %v1379_v0 = vadd.f32 %v1378_v62, %v1315_v36  ;;  %v1450_v46 = vadd.f32 %v1449_v39, %v1419_v38  ;;  %v1991_v48 = vpop.f32.mrf.mxu1 }
 0x12a   : > { %1350 = vst [vmem:[%s2369_s11 + $0x98] sm:$0xff] %v1318_v42  ;;  %v1317_v50 = vadd.f32 %v1230_v44, %v870_v45  ;;  %v885_v47 = vadd.f32 %v1991_v48, %v2638_v51  ;;  %v2043_v52 = vpop.f32.mrf.mxu0  ;;  %v1423_v20 = vmul.f32 %v1318_v42, %v1318_v42 }
 0x12b   : > { %v1451_v2 = vadd.f32 %v1450_v46, %v1420_v41  ;;  %v1380_v12 = vadd.f32 %v1379_v0, %v1316_v60  ;;  %v879_v13 = vpop.f32.mrf.mxu1 }
 0x12c   : > { %1349 = vst [vmem:[%s2369_s11 + $0x90] sm:$0xff] %v1317_v50  ;;  %v1422_v14 = vmul.f32 %v1317_v50, %v1317_v50  ;;  %v1320_v15 = vadd.f32 %v2043_v52, %v885_v47  ;;  %v880_v49 = vadd.f32 %v879_v13, %v2640_v53  ;;  %v1240_v54 = vpop.f32.mrf.mxu0 }
 0x12d   : > { %v1381_v4 = vadd.f32 %v1380_v12, %v1317_v50  ;;  %v1452_v16 = vadd.f32 %v1451_v2, %v1421_v11  ;;  %v1994_v17 = vpop.f32.mrf.mxu1 }
 0x12e   : > { %1352 = vst [vmem:[%s2369_s11 + $0xa8] sm:$0xff] %v1320_v15  ;;  %v1319_v18 = vadd.f32 %v1240_v54, %v880_v49  ;;  %v895_v51 = vadd.f32 %v1994_v17, %v2642_v55  ;;  %v2046_v19 = vpop.f32.mrf.mxu0  ;;  %v1425_v28 = vmul.f32 %v1320_v15, %v1320_v15 }
 0x12f   : > { %v1453_v21 = vadd.f32 %v1452_v16, %v1422_v14  ;;  %v1382_v56 = vadd.f32 %v1381_v4, %v1318_v42  ;;  %v889_v6 = vpop.f32.mrf.mxu1 }
 0x130   : > { %1351 = vst [vmem:[%s2369_s11 + $0xa0] sm:$0xff] %v1319_v18  ;;  %v1424_v22 = vmul.f32 %v1319_v18, %v1319_v18  ;;  %v1322_v23 = vadd.f32 %v2046_v19, %v895_v51  ;;  %v890_v53 = vadd.f32 %v889_v6, %v2644_v57  ;;  %v1250_v24 = vpop.f32.mrf.mxu0 }
 0x131   : > { %v1383_v25 = vadd.f32 %v1382_v56, %v1319_v18  ;;  %v1454_v26 = vadd.f32 %v1453_v21, %v1423_v20  ;;  %v1997_v8 = vpop.f32.mrf.mxu1 }
 0x132   : > { %1354 = vst [vmem:[%s2369_s11 + $0xb8] sm:$0xff] %v1322_v23  ;;  %v1321_v58 = vadd.f32 %v1250_v24, %v890_v53  ;;  %v905_v55 = vadd.f32 %v1997_v8, %v2648_v59  ;;  %v2049_v27 = vpop.f32.mrf.mxu0  ;;  %v1427_v37 = vmul.f32 %v1322_v23, %v1322_v23 }
 0x133   : > { %v1455_v29 = vadd.f32 %v1454_v26, %v1424_v22  ;;  %v1384_v30 = vadd.f32 %v1383_v25, %v1320_v15  ;;  %v899_v31 = vpop.f32.mrf.mxu1 }
 0x134   : > { %1353 = vst [vmem:[%s2369_s11 + $0xb0] sm:$0xff] %v1321_v58  ;;  %v1426_v60 = vmul.f32 %v1321_v58, %v1321_v58  ;;  %v1324_v10 = vadd.f32 %v2049_v27, %v905_v55  ;;  %v900_v57 = vadd.f32 %v899_v31, %v2652_v61  ;;  %v1260_v32 = vpop.f32.mrf.mxu0 }
 0x135   : > { %v1385_v33 = vadd.f32 %v1384_v30, %v1321_v58  ;;  %v1456_v34 = vadd.f32 %v1455_v29, %v1425_v28  ;;  %v2000_v35 = vpop.f32.mrf.mxu1 }
 0x136   : > { %1356 = vst [vmem:[%s2369_s11 + $0xc8] sm:$0xff] %v1324_v10  ;;  %v1323_v36 = vadd.f32 %v1260_v32, %v900_v57  ;;  %v915_v59 = vadd.f32 %v2000_v35, %v2656_v63  ;;  %v2052_v43 = vpop.f32.mrf.mxu0  ;;  %v1429_v50 = vmul.f32 %v1324_v10, %v1324_v10 }
 0x137   : > { %v1457_v38 = vadd.f32 %v1456_v34, %v1426_v60  ;;  %v1386_v39 = vadd.f32 %v1385_v33, %v1322_v23  ;;  %v909_v62 = vpop.f32.mrf.mxu1 }
 0x138   : > { %1355 = vst [vmem:[%s2369_s11 + $0xc0] sm:$0xff] %v1323_v36  ;;  %v1428_v40 = vmul.f32 %v1323_v36, %v1323_v36  ;;  %v1326_v41 = vadd.f32 %v2052_v43, %v915_v59  ;;  %v910_v61 = vadd.f32 %v909_v62, %v2660_v1  ;;  %v1270_v42 = vpop.f32.mrf.mxu0 }
 0x139   : > { %v1387_v45 = vadd.f32 %v1386_v39, %v1323_v36  ;;  %v1458_v44 = vadd.f32 %v1457_v38, %v1427_v37  ;;  %v2003_v0 = vpop.f32.mrf.mxu1 }
 0x13a   : > { %1358 = vst [vmem:[%s2369_s11 + $0xd8] sm:$0xff] %v1326_v41  ;;  %v1325_v46 = vadd.f32 %v1270_v42, %v910_v61  ;;  %v925_v63 = vadd.f32 %v2003_v0, %v2664_v3  ;;  %v2055_v48 = vpop.f32.mrf.mxu0  ;;  %v1431_v16 = vmul.f32 %v1326_v41, %v1326_v41 }
 0x13b   : > { %v1459_v47 = vadd.f32 %v1458_v44, %v1428_v40  ;;  %v1388_v52 = vadd.f32 %v1387_v45, %v1324_v10  ;;  %v919_v11 = vpop.f32.mrf.mxu1 }
 0x13c   : > { %1357 = vst [vmem:[%s2369_s11 + $0xd0] sm:$0xff] %v1325_v46  ;;  %v1430_v2 = vmul.f32 %v1325_v46, %v1325_v46  ;;  %v1328_v12 = vadd.f32 %v2055_v48, %v925_v63  ;;  %v920_v1 = vadd.f32 %v919_v11, %v2668_v5  ;;  %v1280_v13 = vpop.f32.mrf.mxu0 }
 0x13d   : > { %v1389_v14 = vadd.f32 %v1388_v52, %v1325_v46  ;;  %v1460_v15 = vadd.f32 %v1459_v47, %v1429_v50  ;;  %v2006_v49 = vpop.f32.mrf.mxu1 }
 0x13e   : > { %1360 = vst [vmem:[%s2369_s11 + $0xe8] sm:$0xff] %v1328_v12  ;;  %v1327_v54 = vadd.f32 %v1280_v13, %v920_v1  ;;  %v935_v3 = vadd.f32 %v2006_v49, %v2672_v7  ;;  %v2058_v4 = vpop.f32.mrf.mxu0  ;;  %v1433_v22 = vmul.f32 %v1328_v12, %v1328_v12 }
 0x13f   : > { %v1461_v17 = vadd.f32 %v1460_v15, %v1430_v2  ;;  %v1390_v18 = vadd.f32 %v1389_v14, %v1326_v41  ;;  %v929_v51 = vpop.f32.mrf.mxu1 }
 0x140   : > { %1359 = vst [vmem:[%s2369_s11 + $0xe0] sm:$0xff] %v1327_v54  ;;  %v1432_v19 = vmul.f32 %v1327_v54, %v1327_v54  ;;  %v1330_v5 = vadd.f32 %v2058_v4, %v935_v3  ;;  %v930_v20 = vadd.f32 %v929_v51, %v2676_v9  ;;  %v1290_v6 = vpop.f32.mrf.mxu0 }
 0x141   : > { %v1391_v21 = vadd.f32 %v1390_v18, %v1327_v54  ;;  %v1462_v56 = vadd.f32 %v1461_v17, %v1431_v16 }
 0x142   : > { %1362 = vst [vmem:[%s2369_s11 + $0xf8] sm:$0xff] %v1330_v5  ;;  %v1329_v7 = vadd.f32 %v1290_v6, %v930_v20 }
 0x143   : > { %v1463_v23 = vadd.f32 %v1462_v56, %v1432_v19  ;;  %v1392_v53 = vadd.f32 %v1391_v21, %v1328_v12 }
 0x144   : > { %1361 = vst [vmem:[%s2369_s11 + $0xf0] sm:$0xff] %v1329_v7  ;;  %v1434_v9 = vmul.f32 %v1329_v7, %v1329_v7 }
 0x145   : > { %v1393_v24 = vadd.f32 %v1392_v53, %v1329_v7  ;;  %v1464_v25 = vadd.f32 %v1463_v23, %v1433_v22 }
 0x146   : > { %2149 = shalt.err (!%p2146_p7)
}
 0x147   : > { %s2150_s30 = scalar_lea.hbm %s2740_s18, 4096  ;;  %s2154_s7 = scalar_lea.hbm %s2813_s2, 8192 }
 0x148   : > { %p2151_p9 = scmp.ne.s32.totalorder %s2740_s18, %s2150_s30  ;;  %p2155_p12 = scmp.lt.s32.totalorder %s2740_s18, %s2813_s2 }
 0x149   : > { %p2156_p13 = scmp.lt.s32.totalorder %s2154_s7, %s2150_s30 }
 0x14a   : > { %p2152_p10 = pnand %p2151_p9, %p2343_p4 }
 0x14b   : > { %p2157_p0 = por %p2156_p13, %p2155_p12 }
 0x14c   : > { %p2153_p11 = pneg %p2152_p10 }
 0x14e   : > { %p2158_p1 = pnand %p2157_p0, %p2153_p11 }
 0x150   : > { %2161 = shalt.err (!%p2158_p1)
}
 0x151   : > { %s2268_s10 = smov 128   ;;  %s2269_s13 = smov 8   ;;  %v1435_v26 = vmul.f32 %v1330_v5, %v1330_v5  ;;  %v1394_v8 = vadd.f32 %v1393_v24, %v1330_v5  ;;  %v1465_v58 = vadd.f32 %v1464_v25, %v1434_v9  ;;  %v1363_v33 = vld [vmem:[#allocation4] sm:$0x1]  ;;  %v1403_v36 = vld [vmem:[#allocation6] sm:$0x1] }
 0x152   : > { %2064 = dma.vmem_to_hbm [thread:$0]  (%p2343_p4), %s2742_s12, 4096, %s2740_s18, %s2748_s21, %s2268_s10, %s2268_s10, %s2269_s13  }
 0x153   : > { %v1395_v55 = vrot.slane %v1394_v8, 4  ;;  %v1466_v27 = vadd.f32 %v1465_v58, %v1435_v26  ;;  %s2270_s14 = smov [#allocation4]   ;;  %s2271_s26 = smov [#allocation6]  }
 0x154   : > { %s1505_s22 = sshll.u32 %s2270_s14, 4  ;;  %s1516_s12 = sshll.u32 %s2271_s26, 4  ;;  %s1506_s22 = int_to_ptr.vmem [resolvable:$true] %s1505_s22  ;;  %s1517_s12 = int_to_ptr.vmem [resolvable:$true] %s1516_s12 }
 0x155   : > { %v1467_v28 = vrot.slane %v1466_v27, 4  ;;  %v1396_v29 = vadd.f32 %v1395_v55, %v1394_v8  ;;  %s2162_s18 = scalar_lea.vmem %s1506_s22, 16  ;;  %s2168_s21 = scalar_lea.vmem %s1506_s22, 32 }
 0x156   : > { %p2163_p4 = scmp.ne.s32.totalorder %s1506_s22, %s2162_s18  ;;  %p2169_p6 = scmp.lt.s32.totalorder %s1506_s22, %s1506_s22 }
 0x157   : > { %v1397_v30 = vrot.slane %v1396_v29, 2  ;;  %v1468_v31 = vadd.f32 %v1467_v28, %v1466_v27  ;;  %p2170_p7 = scmp.lt.s32.totalorder %s2168_s21, %s2162_s18 }
 0x158   : > { %p2164_p3 = pnand %p2163_p4, %p2333_p2 }
 0x159   : > { %v1398_v60 = vadd.f32 %v1397_v30, %v1396_v29  ;;  %v1469_v10 = vrot.slane %v1468_v31, 2  ;;  %p2171_p9 = por %p2170_p7, %p2169_p6 }
 0x15a   : > { %p2165_p5 = pneg %p2164_p3 }
 0x15b   : > { %v1399_v57 = vrot.slane %v1398_v60, 1  ;;  %v1470_v32 = vadd.f32 %v1469_v10, %v1468_v31 }
 0x15c   : > { %p2172_p10 = pnand %p2171_p9, %p2165_p5 }
 0x15d   : > { %v1400_v34 = vadd.f32 %v1399_v57, %v1398_v60  ;;  %v1471_v35 = vrot.slane %v1470_v32, 1 }
 0x15f   : > { %v1401_v59 = vadd.f32 %v1400_v34, %v1363_v33  ;;  %v1472_v43 = vadd.f32 %v1471_v35, %v1470_v32 }
 0x161   : > { %1402 = vst [vmem:[#allocation4] sm:$0x1] %v1401_v59  ;;  %v1473_v37 = vadd.f32 %v1472_v43, %v1403_v36 }
 0x162   : > { %2175 = shalt.err (!%p2172_p10)
}
 0x163   : > { %2066 = dma.vmem_to_hbm [thread:$0]  (%p2333_p2), %s1506_s22, 16, %s2814_s3, [#allocation5]   ;;  %1474 = vst [vmem:[#allocation6] sm:$0x1] %v1473_v37 }
 0x164   : > { %s2186_s5 = scalar_lea.vmem %s1517_s12, 16  ;;  %s2192_s30 = scalar_lea.vmem %s1517_s12, 32 }
 0x165   : > { %p2187_p11 = scmp.ne.s32.totalorder %s1517_s12, %s2186_s5  ;;  %p2193_p0 = scmp.lt.s32.totalorder %s1517_s12, %s1517_s12 }
 0x166   : > { %p2194_p1 = scmp.lt.s32.totalorder %s2192_s30, %s2186_s5 }
 0x167   : > { %p2188_p12 = pnand %p2187_p11, %p2333_p2 }
 0x168   : > { %p2195_p4 = por %p2194_p1, %p2193_p0 }
 0x169   : > { %p2189_p13 = pneg %p2188_p12 }
 0x16b   : > { %p2196_p3 = pnand %p2195_p4, %p2189_p13 }
 0x16d   : > { %2199 = shalt.err (!%p2196_p3)
}
 0x16e   : > { %2068 = dma.vmem_to_hbm [thread:$0]  (%p2333_p2), %s1517_s12, 16, %s2815_s4, [#allocation5]  }
 0x16f   : > { %2235 = dma.done.wait (%p2333_p2), [#allocation5], 32  }
 0x170   : > { %2237 = vsyncadd (%p2333_p2), [#allocation5], 4294967264 }
 0x171 PF: > { %p2082_p5 = scmp.ge.s32.totalorder %s2264_s20, 2  ;;  %s1536_s7 = sand.u32 1, %s2244_s15  }
 0x172   : > { %s1537_s8 = scalar_lea.sflag [#allocation3], %s1536_s7 }
 0x173   : > { %p2075_p6 = pnand %p2082_p5, %p2350_p8 }
 0x175   : > { %p2076_p7 = pneg %p2075_p6 }
 0x177   : > { %2239 = dma.done.wait (%p2076_p7), %s1537_s8, 4096  }
 0x178   : > { %2241 = vsyncadd (%p2076_p7), %s1537_s8, 4294963200  ;;  %s19_s20 = sadd.s32 1, %s2264_s20   ;;  %s2819_s15 = smov %s2248_s16 }
 0x179   : > { %p16_p9 = scmp.ge.s32.totalorder %s19_s20, 4   ;;  %s2820_s16 = smov %s2252_s17 }
 0x17a   : > { %s2821_s17 = smov %s2356_s29  ;;  %s2822_s18 = smov %s2260_s19 }
 0x17b   : > { %s2823_s19 = smov %s2825_s23  ;;  %18 = sbr.rel (!%p16_p9) target bundleno = 5 (0x5), region = 88 }
 0x180   :  { %1542 = vsyncpa [#allocation3], 1 }
 0x181   :  { %1544 = vsyncpa [#allocation3 + $0x1], 1 }
 0x182   :  { %1545 = vsyncpa [#allocation5], 1 }

</bundles_post_ra>
